<compile_context>
chip_gen: v6e
topology: v6e:2x2x1
jax: 0.10.0
libtpu: 0.0.40
codegen_flags: <defaults>
</compile_context>

<pallas_src>
import jax
import jax.numpy as jnp
from jax.experimental import pallas as pl
from jax.experimental.pallas import tpu as pltpu


def _make_divisible(ch, divisor=8, min_ch=None):
    if min_ch is None:
        min_ch = divisor
    new_ch = max(min_ch, int(ch + divisor / 2) // divisor * divisor)
    if new_ch < 0.9 * ch:
        new_ch += divisor
    return new_ch


def _se_kernel(x_ref, w1t_ref, b1_ref, w2t_ref, b2_ref, o_ref):
    # x_ref block: [Nb, C, HW]; w1t [C, Cs], b1 [1, Cs], w2t [Cs, C], b2 [1, C]
    x = x_ref[...]
    xf = x.astype(jnp.float32)

    # adaptive_avg_pool2d(x, 1): mean over the spatial (lane) axis -> [Nb, C]
    pooled = jnp.mean(xf, axis=2)

    # fc1 (1x1 conv == linear) + ReLU, batched over Nb samples -> [Nb, Cs]
    s1 = jnp.dot(pooled, w1t_ref[...],
                 preferred_element_type=jnp.float32) + b1_ref[...]
    s1 = jnp.maximum(s1, 0.0)

    # fc2 -> [Nb, C], then hardsigmoid = clip((s + 3) / 6, 0, 1) via mul by 1/6
    s2 = jnp.dot(s1, w2t_ref[...],
                 preferred_element_type=jnp.float32) + b2_ref[...]
    hs = jnp.clip((s2 + 3.0) * jnp.float32(1.0 / 6.0), 0.0, 1.0)

    # per-(n, c) scale broadcast over the spatial axis
    o_ref[...] = (xf * hs[:, :, None]).astype(o_ref.dtype)


def _pick_batch_block(n, c, hw, itemsize, target_bytes=2 << 20):
    """Largest divisor of n such that the x tile is <= ~target_bytes while
    keeping at least 2 grid steps whenever n >= 2 (v7x has 2 TensorCores)."""
    per_sample = max(1, c * hw * itemsize)
    nb_cap = max(1, target_bytes // per_sample)
    nb_cap = min(int(nb_cap), max(1, n // 2))
    nb = 1
    for d in range(1, nb_cap + 1):
        if n % d == 0:
            nb = d
    return nb


def squeeze_excitation(x, w1, b1, w2, b2):
    """x: [N, C, H, W].  w1: [Cs, C], b1: [Cs], w2: [C, Cs], b2: [C]."""
    N, C, H, W = x.shape
    Cs = w1.shape[0]
    HW = H * W
    itemsize = jnp.dtype(x.dtype).itemsize

    x2 = x.reshape(N, C, HW)
    # Pre-transpose 1x1-conv weights so the in-kernel matmuls are row-major
    # [Nb, C] @ [C, Cs] and [Nb, Cs] @ [Cs, C].
    w1t = jnp.transpose(w1)          # [C, Cs]
    w2t = jnp.transpose(w2)          # [Cs, C]
    b1r = b1.reshape(1, Cs)
    b2r = b2.reshape(1, C)

    nb = _pick_batch_block(N, C, HW, itemsize)
    grid = (N // nb,)

    # VMEM budget: double-buffered input + output slabs, plus weights/biases.
    tile_bytes = nb * C * HW * itemsize
    weight_bytes = 4 * (w1t.size + w2t.size + b1r.size + b2r.size)
    vmem_needed = 2 * 2 * tile_bytes + 2 * weight_bytes + (2 << 20)
    # Stay below v7x's 64 MiB physical VMEM; keep at least the 32 MiB default.
    vmem_limit = int(min(max(vmem_needed, 32 << 20), 60 << 20))

    # NOTE: for late SE layers with HW < 128 (e.g. 7x7=49) the output lane dim
    # would be masked; there one would fold channels/samples into the lane axis.
    out = pl.pallas_call(
        _se_kernel,
        out_shape=jax.ShapeDtypeStruct((N, C, HW), x.dtype),
        grid_spec=pltpu.PrefetchScalarGridSpec(
            num_scalar_prefetch=0,
            grid=grid,
            in_specs=[
                pl.BlockSpec((nb, C, HW), lambda n: (n, 0, 0)),   # x slab
                pl.BlockSpec((C, Cs), lambda n: (0, 0)),          # fc1 weight^T
                pl.BlockSpec((1, Cs), lambda n: (0, 0)),          # fc1 bias row
                pl.BlockSpec((Cs, C), lambda n: (0, 0)),          # fc2 weight^T
                pl.BlockSpec((1, C), lambda n: (0, 0)),           # fc2 bias row
            ],
            out_specs=pl.BlockSpec((nb, C, HW), lambda n: (n, 0, 0)),
        ),
        compiler_params=pltpu.CompilerParams(
            dimension_semantics=("parallel",),
            vmem_limit_bytes=vmem_limit,
        ),
    )(x2, w1t, b1r, w2t, b2r)

    return out.reshape(N, C, H, W)


def _reference(x, w1, b1, w2, b2):
    pooled = jnp.mean(x.astype(jnp.float32), axis=(2, 3))   # [N, C]
    s1 = jnp.maximum(pooled @ w1.T + b1, 0.0)                # [N, Cs]
    s2 = s1 @ w2.T + b2                                      # [N, C]
    hs = jnp.clip((s2 + 3.0) / 6.0, 0.0, 1.0)
    return (hs[:, :, None, None] * x.astype(jnp.float32)).astype(x.dtype)


if __name__ == "__main__":
    # SE config: input_c=4, squeeze_factor=4 -> squeeze_c = _make_divisible(1, 8) = 8
    N, C, H, W = 2, 4, 16, 16
    Cs = _make_divisible(C // 4, 8)

    key = jax.random.PRNGKey(0)
    kx, kw1, kb1, kw2, kb2 = jax.random.split(key, 5)
    x = jax.random.normal(kx, (N, C, H, W), dtype=jnp.float32)
    # 1x1 conv weights [out, in, 1, 1] collapse to [out, in] linear weights.
    w1 = jax.random.normal(kw1, (Cs, C), dtype=jnp.float32) * 0.1
    b1 = jax.random.normal(kb1, (Cs,), dtype=jnp.float32) * 0.1
    w2 = jax.random.normal(kw2, (C, Cs), dtype=jnp.float32) * 0.1
    b2 = jax.random.normal(kb2, (C,), dtype=jnp.float32) * 0.1

    out = squeeze_excitation(x, w1, b1, w2, b2)
    out = jax.block_until_ready(out)

    ref = _reference(x, w1, b1, w2, b2)
    assert out.shape == (N, C, H, W)
    assert jnp.allclose(out, ref, atol=1e-5, rtol=1e-5), "mismatch vs reference"
    # TODO(synk): the full MobileNet backbone (conv/BN/ReLU6 stacks, depthwise
    # convs, classifier) is left to standard XLA; only the SE block is a custom
    # Pallas kernel.
    print("KERNEL_OK")
</pallas_src>

<mosaic_0001>
module attributes {stable_mosaic.version = 11 : i64} {
  func.func @_se_kernel(%arg0: i32, %arg1: memref<1x4x256xf32, #tpu.memory_space<vmem>>, %arg2: memref<4x8xf32, #tpu.memory_space<vmem>>, %arg3: memref<1x8xf32, #tpu.memory_space<vmem>>, %arg4: memref<8x4xf32, #tpu.memory_space<vmem>>, %arg5: memref<1x4xf32, #tpu.memory_space<vmem>>, %arg6: memref<1x4x256xf32, #tpu.memory_space<vmem>>) attributes {dimension_semantics = [#tpu.dimension_semantics<parallel>], iteration_bounds = array<i64: 2>, scalar_prefetch = 0 : i64, scratch_operands = 0 : i64, tpu.core_type = #tpu.core_type<tc>, window_params = [{transform_indices = @transform_0, window_bounds = array<i64: 1, 4, 256>}, {pipeline_mode = #tpu.pipeline_mode<synchronous>, transform_indices = @transform_1, window_bounds = array<i64: 4, 8>}, {pipeline_mode = #tpu.pipeline_mode<synchronous>, transform_indices = @transform_2, window_bounds = array<i64: 1, 8>}, {pipeline_mode = #tpu.pipeline_mode<synchronous>, transform_indices = @transform_3, window_bounds = array<i64: 8, 4>}, {pipeline_mode = #tpu.pipeline_mode<synchronous>, transform_indices = @transform_4, window_bounds = array<i64: 1, 4>}, {transform_indices = @transform_5, window_bounds = array<i64: 1, 4, 256>}]} {
    %c0 = arith.constant 0 : index
    %c0_0 = arith.constant 0 : index
    %c0_1 = arith.constant 0 : index
    %0 = vector.load %arg1[%c0, %c0_0, %c0_1] : memref<1x4x256xf32, #tpu.memory_space<vmem>>, vector<1x4x256xf32>
    %cst = arith.constant dense<0.000000e+00> : vector<1x4xf32>
    %1 = vector.multi_reduction <add>, %0, %cst [2] : vector<1x4x256xf32> to vector<1x4xf32>
    %cst_2 = arith.constant 2.560000e+02 : f32
    %2 = vector.broadcast %cst_2 : f32 to vector<1x4xf32>
    %3 = arith.divf %1, %2 : vector<1x4xf32>
    %c0_3 = arith.constant 0 : index
    %c0_4 = arith.constant 0 : index
    %4 = vector.load %arg2[%c0_3, %c0_4] : memref<4x8xf32, #tpu.memory_space<vmem>>, vector<4x8xf32>
    %cst_5 = arith.constant dense<0.000000e+00> : vector<1x8xf32>
    %5 = tpu.matmul %3, %4, %cst_5 {dimension_numbers = #tpu.dot_dimension_numbers<[1], [0], [0], [1], [0, 0, 1, 1], [], []>} : vector<1x4xf32>, vector<4x8xf32>, vector<1x8xf32> -> vector<1x8xf32>
    %c0_6 = arith.constant 0 : index
    %c0_7 = arith.constant 0 : index
    %6 = vector.load %arg3[%c0_6, %c0_7] : memref<1x8xf32, #tpu.memory_space<vmem>>, vector<1x8xf32>
    %7 = arith.addf %5, %6 : vector<1x8xf32>
    %cst_8 = arith.constant 0.000000e+00 : f32
    %8 = vector.broadcast %cst_8 : f32 to vector<1x8xf32>
    %9 = arith.maximumf %7, %8 : vector<1x8xf32>
    %c0_9 = arith.constant 0 : index
    %c0_10 = arith.constant 0 : index
    %10 = vector.load %arg4[%c0_9, %c0_10] : memref<8x4xf32, #tpu.memory_space<vmem>>, vector<8x4xf32>
    %cst_11 = arith.constant dense<0.000000e+00> : vector<1x4xf32>
    %11 = tpu.matmul %9, %10, %cst_11 {dimension_numbers = #tpu.dot_dimension_numbers<[1], [0], [0], [1], [0, 0, 1, 1], [], []>} : vector<1x8xf32>, vector<8x4xf32>, vector<1x4xf32> -> vector<1x4xf32>
    %c0_12 = arith.constant 0 : index
    %c0_13 = arith.constant 0 : index
    %12 = vector.load %arg5[%c0_12, %c0_13] : memref<1x4xf32, #tpu.memory_space<vmem>>, vector<1x4xf32>
    %13 = arith.addf %11, %12 : vector<1x4xf32>
    %cst_14 = arith.constant 3.000000e+00 : f32
    %14 = vector.broadcast %cst_14 : f32 to vector<1x4xf32>
    %15 = arith.addf %13, %14 : vector<1x4xf32>
    %cst_15 = arith.constant 0.166666672 : f32
    %16 = vector.broadcast %cst_15 : f32 to vector<1x4xf32>
    %17 = arith.mulf %15, %16 : vector<1x4xf32>
    %cst_16 = arith.constant 0.000000e+00 : f32
    %cst_17 = arith.constant 1.000000e+00 : f32
    %18 = vector.broadcast %cst_16 : f32 to vector<1x4xf32>
    %19 = arith.maximumf %18, %17 : vector<1x4xf32>
    %20 = vector.broadcast %cst_17 : f32 to vector<1x4xf32>
    %21 = arith.minimumf %20, %19 : vector<1x4xf32>
    %22 = vector.shape_cast %21 : vector<1x4xf32> to vector<1x4x1xf32>
    %23 = vector.broadcast %22 : vector<1x4x1xf32> to vector<1x4x256xf32>
    %24 = arith.mulf %0, %23 : vector<1x4x256xf32>
    %c0_18 = arith.constant 0 : index
    %c0_19 = arith.constant 0 : index
    %c0_20 = arith.constant 0 : index
    %25 = vector.load %arg6[%c0_18, %c0_19, %c0_20] : memref<1x4x256xf32, #tpu.memory_space<vmem>>, vector<1x4x256xf32>
    tpu.vector_store %arg6[%c0_18, %c0_19, %c0_20], %24 {strides = array<i32>} : memref<1x4x256xf32, #tpu.memory_space<vmem>>, vector<1x4x256xf32>,
    return
  }
  func.func @transform_0(%arg0: i32) -> (i32, i32, i32) {
    %c0_i32 = arith.constant 0 : i32
    %c0_i32_0 = arith.constant 0 : i32
    %c0_i32_1 = arith.constant 0 : i32
    return %arg0, %c0_i32, %c0_i32_0 : i32, i32, i32
  }
  func.func @transform_1(%arg0: i32) -> (i32, i32) {
    %c0_i32 = arith.constant 0 : i32
    %c0_i32_0 = arith.constant 0 : i32
    %c0_i32_1 = arith.constant 0 : i32
    return %c0_i32, %c0_i32_0 : i32, i32
  }
  func.func @transform_2(%arg0: i32) -> (i32, i32) {
    %c0_i32 = arith.constant 0 : i32
    %c0_i32_0 = arith.constant 0 : i32
    %c0_i32_1 = arith.constant 0 : i32
    return %c0_i32, %c0_i32_0 : i32, i32
  }
  func.func @transform_3(%arg0: i32) -> (i32, i32) {
    %c0_i32 = arith.constant 0 : i32
    %c0_i32_0 = arith.constant 0 : i32
    %c0_i32_1 = arith.constant 0 : i32
    return %c0_i32, %c0_i32_0 : i32, i32
  }
  func.func @transform_4(%arg0: i32) -> (i32, i32) {
    %c0_i32 = arith.constant 0 : i32
    %c0_i32_0 = arith.constant 0 : i32
    %c0_i32_1 = arith.constant 0 : i32
    return %c0_i32, %c0_i32_0 : i32, i32
  }
  func.func @transform_5(%arg0: i32) -> (i32, i32, i32) {
    %c0_i32 = arith.constant 0 : i32
    %c0_i32_0 = arith.constant 0 : i32
    %c0_i32_1 = arith.constant 0 : i32
    return %arg0, %c0_i32, %c0_i32_0 : i32, i32, i32
  }
}

</mosaic_0001>

<bundles_post_ra>
// kernel: tpu_custom_call.1
= control target key start
LH: loop header
LB: loop body
LE: loop exit
PB: predicated region body
PF: predicated region fallthrough
CT: control target
= control target key end

     0   :  { %10 = vsyncpa [#allocation3], 0  ;;  %s891_s0 = inlined_call_operand.hbm [shape: f32[2,4,256], index: 0, kind: input, shape index: {}]   ;;  %s892_s1 = inlined_call_operand.vmem [shape: f32[4,8], index: 1, kind: input, shape index: {}]   ;;  %s893_s2 = inlined_call_operand.vmem [shape: f32[1,8], index: 2, kind: input, shape index: {}]   ;;  %s894_s3 = inlined_call_operand.vmem [shape: f32[8,4], index: 3, kind: input, shape index: {}]   ;;  %s895_s4 = inlined_call_operand.vmem [shape: f32[1,4], index: 4, kind: input, shape index: {}]   ;;  %s896_s5 = inlined_call_operand.hbm [shape: f32[2,4,256], index: 5, kind: output, shape index: {}]  }
   0x1   :  { %12 = vsyncpa [#allocation3 + $0x1], 0 }
   0x2   :  { %13 = vsyncpa [#allocation4], 0 }
   0x3   :  { %15 = vsyncpa [#allocation4 + $0x1], 0  ;;  %s734_s18 = smov 0   ;;  %s736_s19 = smov 0  }
   0x4   :  { %s738_s20 = smov 0   ;;  %s740_s21 = smov 0  }
   0x5 LB: > { %s755_s22 = sadd.s32 4294967295, %s697_s21   ;;  %s522_s23 = sadd.s32 4294967294, %s697_s21   ;;  %s697_s21 = sphi %s740_s21, %s913_s21   ;;  %s693_s20 = sphi %s738_s20, %s912_s20   ;;  %s689_s19 = sphi %s736_s19, %s911_s19   ;;  %s685_s18 = sphi %s734_s18, %s910_s18  }
   0x6   : > { %s759_s24 = sadd.s32 1, %s697_s21   ;;  %s28_s25 = sadd.s32 1, %s693_s20 }
   0x7   : > { %s25_s26 = ssub.s32 %s697_s21, %s759_s24  ;;  %p35_p0 = scmp.ne.s32.totalorder %s693_s20, %s689_s19 }
   0x8   : > { %p26_p1 = scmp.eq.s32.totalorder %s25_s26, 0  ;;  %p36_p2 = scmp.eq.s32.totalorder %s697_s21, 0 }
   0x9   : > { %p41_p3 = scmp.ne.s32.totalorder %s689_s19, %s685_s18  ;;  %p42_p4 = scmp.eq.s32.totalorder %s755_s22, 0 }
   0xa   : > { %s771_s27 = scalar_select %p26_p1, %s693_s20, %s28_s25  }
   0xb   : > { %p773_p5 = por %p36_p2, %p35_p0  ;;  %p777_p6 = por %p42_p4, %p41_p3 }
   0xc   : > { %p149_p7 = scmp.eq.s32.totalorder %s755_s22, 1  ;;  %p155_p8 = scmp.eq.s32.totalorder %s522_s23, 1 }
   0xd   : > { %s900_s29 = scalar_select %p777_p6, 1, 0 }
   0xe   : > { %p567_p10 = scmp.lt.s32.totalorder %s697_s21, 2  ;;  %p784_p11 = por %p149_p7, %p35_p0 }
   0xf   : > { %p788_p12 = por %p155_p8, %p41_p3  ;;  %s187_s7 = sand.u32 1, %s693_s20  }
  0x10   : > { %s901_s30 = scalar_select %p784_p11, 1, 0 }
  0x11   : > { %s902_s6 = scalar_select %p788_p12, 1, 0 }
  0x12   : > { %s539_s8 = sshll.u32 %s697_s21, 7  ;;  %s525_s9 = sshll.u32 %s187_s7, 3 }
  0x13   : > { %s797_s12 = scalar_lea.hbm %s891_s0, %s539_s8  ;;  %s191_s13 = scalar_lea.vmem [#allocation2], %s525_s9 }
  0x14   : > { %s199_s14 = sshll.u32 %s191_s13, 4  ;;  %p801_p13 = pnand %p567_p10, %p773_p5  ;;  %s805_s14 = int_to_ptr.vmem [resolvable:$true] %s199_s14 }
  0x15   : > { %s188_s16 = scalar_lea.sflag [#allocation3], %s187_s7  ;;  %s605_s17 = scalar_lea.hbm %s797_s12, 128 }
  0x16   : > { %p606_p2 = scmp.ne.s32.totalorder %s797_s12, %s605_s17  ;;  %p607_p3 = pneg %p801_p13 }
  0x17   : > { %s610_s26 = scalar_lea.hbm %s891_s0, 256  ;;  %p611_p5 = scmp.lt.s32.totalorder %s797_s12, %s891_s0 }
  0x18   : > { %p608_p4 = pnand %p607_p3, %p606_p2  ;;  %p612_p8 = scmp.lt.s32.totalorder %s610_s26, %s605_s17 }
  0x1a   : > { %p609_p7 = pneg %p608_p4  ;;  %p613_p10 = por %p612_p8, %p611_p5 }
  0x1c   : > { %p614_p9 = pnand %p613_p10, %p609_p7 }
  0x1e   : > { %617 = shalt.err (!%p614_p9)
}
  0x1f   : > { %s618_s7 = scalar_lea.vmem %s805_s14, 128  ;;  %s699_s9 = smov [#allocation2]  }
  0x20   : > { %p619_p0 = scmp.ne.s32.totalorder %s805_s14, %s618_s7  ;;  %s623_s10 = sshll.u32 %s699_s9, 4  ;;  %s624_s10 = int_to_ptr.vmem [resolvable:$false] %s623_s10 }
  0x21   : > { %s625_s11 = scalar_lea.vmem %s624_s10, 256  ;;  %p626_p4 = scmp.lt.s32.totalorder %s805_s14, %s624_s10 }
  0x22   : > { %p621_p1 = pnand %p619_p0, %p607_p3  ;;  %p627_p12 = scmp.lt.s32.totalorder %s625_s11, %s618_s7 }
  0x24   : > { %p622_p2 = pneg %p621_p1  ;;  %p628_p11 = por %p627_p12, %p626_p4 }
  0x26   : > { %p629_p6 = pnand %p628_p11, %p622_p2 }
  0x28   : > { %632 = shalt.err (!%p629_p6)
}
  0x29   : > { %562 = dma.hbm_to_vmem [thread:$0]  (!%p801_p13), %s797_s12, 128, %s805_s14, %s188_s16  }
  0x2a   : > { %p904_p9 = scmp.lt.s32.totalorder %s697_s21, 3  ;;  %p905_p7 = scmp.ge.s32.totalorder %s697_s21, 1 }
  0x2c   : > { %p205_p0 = pnand %p905_p7, %p904_p9 }
  0x2d   : > { %s832_s13 = sand.u32 (!%p205_p0), 1, %s689_s19   ;;  %p906_p6 = scmp.ne.s32.totalorder (!%p205_p0), %s900_s29, 0 }
  0x2e   : > { %208 = sbr.rel (%p205_p0) target bundleno = 734 (0x2de), region = 40  ;;  %s529_s17 = sshll.u32 (!%p205_p0), %s832_s13, 3 }
  0x2f   : > { %s211_s23 = scalar_lea.sflag (!%p205_p0), [#allocation3], %s832_s13  ;;  %s214_s15 = scalar_lea.vmem (!%p205_p0), [#allocation2], %s529_s17 }
  0x33   : > { %676 = dma.done.wait (%p906_p6), %s211_s23, 128  }
  0x34   : > { %678 = vsyncadd (%p906_p6), %s211_s23, 4294967168  ;;  %vm245_vm0 = vcmask 1043456   ;;  %v241_v0 = vld [vmem:[%s214_s15] sm:$0xff]  ;;  %v700_v5 = vmov 0.0   ;;  %vm701_vm1 = vmmov 0   ;;  %v256_v7 = vlaneseq  ;;  %s540_s7 = sshll.u32 %s755_s22, 7 }
  0x35   : > { %v243_v1 = vcombine.high %v241_v0, %v241_v0  ;;  %v246_v2 = vsel %vm245_vm0, %v241_v0, 0.0  ;;  %545 = vmatprep.subr.mxu0 %v700_v5  ;;  %v253_v6 = vld [vmem:[%s892_s1] sm:$0xf]  ;;  %550 = vmatprep.subr.mxu1 %v700_v5  ;;  %vm262_vm2 = vcmask 31744   ;;  %vm341_vm3 = vcmask 64512   ;;  %s240_s9 = scalar_lea.vmem [#allocation5], %s529_s17  ;;  %s450_s15 = scalar_lea.hbm %s896_s5, %s540_s7 }
  0x36   : > { %546 = vmatpush3.msk.msra.mxu0 %vm245_vm0, %v253_v6  ;;  %547 = vmatprep.mubr.msk.f32.mxu0 %vm701_vm1, %v700_v5  ;;  %v257_v8 = vand.u32 127, %v256_v7  ;;  %v259_v9 = vshrl.u32 %v256_v7, 7  ;;  %v339_v14 = vld [vmem:[%s894_s3] sm:$0xff]  ;;  %v702_v30 = vmov 839922192   ;;  %s452_s10 = sshll.u32 %s240_s9, 4  ;;  %s453_s10 = int_to_ptr.vmem [resolvable:$true] %s452_s10 }
  0x37   : > { %v247_v3 = vsel %vm245_vm0, %v243_v1, 0.0  ;;  %552 = vmatprep.mubr.msk.f32.mxu1 %vm701_vm1, %v700_v5  ;;  %551 = vmatpush3.msra.mxu1 %v339_v14  ;;  %v254_v15 = vld [vmem:[%s893_s2] sm:$0x1]  ;;  %v428_v31 = vunpack.c.l.s4 %v702_v30  ;;  %s438_s12 = scalar_lea.sflag [#allocation4], %s832_s13  ;;  %s633_s14 = scalar_lea.vmem %s453_s10, 128 }
  0x38   : > { %v248_v4 = vadd.f32 %v247_v3, %v246_v2  ;;  %v260_v10 = vsub.s32 %v257_v8, %v259_v9  ;;  %v340_v20 = vld [vmem:[%s895_s4] sm:$0x1]  ;;  %v421_v27 = vsub.s32 0, %v259_v9  ;;  %p634_p11 = scmp.ne.s32.totalorder %s453_s10, %s633_s14  ;;  %p907_p12 = scmp.ne.s32.totalorder %s901_s30, 0 }
  0x39   : > { %v429_v32 = vunpack.c.0.s8 %v428_v31  ;;  %s703_s29 = smov [#allocation5]  }
  0x3a   : > { %249 = vadd.xlane.f32.xlu0 %v248_v4  ;;  %p635_p13 = pnand %p634_p11, %p907_p12  ;;  %s637_s16 = sshll.u32 %s703_s29, 4  ;;  %s638_s16 = int_to_ptr.vmem [resolvable:$false] %s637_s16 }
  0x3b   : > { %v432_v33 = vsub.s32 %v429_v32, %v259_v9  ;;  %s639_s22 = scalar_lea.vmem %s638_s16, 256  ;;  %p640_p3 = scmp.lt.s32.totalorder %s453_s10, %s638_s16 }
  0x3c   : > { %p636_p1 = pneg %p635_p13  ;;  %p641_p5 = scmp.lt.s32.totalorder %s639_s22, %s633_s14 }
  0x3e   : > { %p642_p8 = por %p641_p5, %p640_p3 }
  0x40   : > { %p643_p10 = pnand %p642_p8, %p636_p1 }
  0xc3   : > { %v250_v11 = vpop.xlane.xlu0 %249 }
  0xc4   : > { %v252_v12 = vmul.f32 0.00390625, %v250_v11 }
  0xc6   : > { %v261_v13 = vrot.slane %v252_v12, %v260_v10 }
  0xc8   : > { %548 = vmatmul.mubr.msk.f32.vlgmr.msra.gmra.mxu0 %vm262_vm2, %v261_v13 }
 0x188   : > { %v334_v16 = vpop.f32.mrf.mxu0 }
 0x189   : > { %v335_v17 = vadd.f32 %v334_v16, %v254_v15 }
 0x18a   : > { %v549_v18 = vpop.f32.mrf.mxu0 }
 0x18b   : > { %v338_v19 = vmax.f32 %v335_v17, 0.0 }
 0x18d   : > { %553 = vmatmul.mubr.msk.f32.vlgmr.msra.gmra.mxu1 %vm341_vm3, %v338_v19 }
 0x24d   : > { %v411_v21 = vpop.f32.mrf.mxu1 }
 0x24e   : > { %v412_v22 = vadd.f32 %v411_v21, %v340_v20 }
 0x24f   : > { %v554_v23 = vpop.f32.mrf.mxu1 }
 0x250   : > { %v415_v24 = vadd.f32 3.0, %v412_v22 }
 0x252   : > { %v416_v25 = vmul.f32 0.16666667, %v415_v24 }
 0x254   : > { %v417_v26 = vmax.f32 %v416_v25, 0.0 }
 0x256   : > { %v418_v28 = vmin.f32 %v417_v26, 1.0 }
 0x258   : > { %v422_v29 = vrot.slane %v418_v28, %v421_v27 }
 0x25a   : > { %424 = vbcast.lane.b32.xlu0 %v422_v29, 256 }
 0x2cc   : > { %v425_v34 = vpop.permute.xlu0 %424 }
 0x2cd   : > { %v433_v35 = vrot.slane %v425_v34, %v432_v33 }
 0x2cf   : > { %v435_v36 = vmul.f32 %v433_v35, %v241_v0 }
 0x2d1   : > { %436 = vst [vmem:[%s240_s9] sm:$0xff] %v435_v36 }
 0x2d2   : > { %646 = shalt.err (!%p643_p10)
}
 0x2d3   : > { %s647_s17 = scalar_lea.hbm %s450_s15, 128  ;;  %s651_s26 = scalar_lea.hbm %s896_s5, 256 }
 0x2d4   : > { %p648_p2 = scmp.ne.s32.totalorder %s450_s15, %s647_s17  ;;  %p652_p7 = scmp.lt.s32.totalorder %s450_s15, %s896_s5 }
 0x2d5   : > { %p653_p0 = scmp.lt.s32.totalorder %s651_s26, %s647_s17 }
 0x2d6   : > { %p649_p4 = pnand %p648_p2, %p907_p12 }
 0x2d7   : > { %p654_p6 = por %p653_p0, %p652_p7 }
 0x2d8   : > { %p650_p9 = pneg %p649_p4 }
 0x2da   : > { %p655_p11 = pnand %p654_p6, %p650_p9 }
 0x2dc   : > { %658 = shalt.err (!%p655_p11)
}
 0x2dd   : > { %557 = dma.vmem_to_hbm [thread:$0]  (%p907_p12), %s453_s10, 128, %s450_s15, %s438_s12  }
 0x2de PF: > { %s464_s7 = sand.u32 1, %s685_s18   ;;  %p908_p13 = scmp.ne.s32.totalorder %s902_s6, 0 }
 0x2df   : > { %p909_p1 = scmp.ge.s32.totalorder %s697_s21, 2  ;;  %s465_s9 = scalar_lea.sflag [#allocation4], %s464_s7 }
 0x2e1   : > { %p564_p3 = pnand %p909_p1, %p908_p13 }
 0x2e3   : > { %p565_p5 = pneg %p564_p3 }
 0x2e5   : > { %680 = dma.done.wait (%p565_p5), %s465_s9, 128  }
 0x2e6   : > { %682 = vsyncadd (%p565_p5), %s465_s9, 4294967168  ;;  %p18_p8 = scmp.ge.s32.totalorder %s759_s24, 4   ;;  %s910_s18 = smov %s689_s19 }
 0x2e7   : > { %s911_s19 = smov %s693_s20  ;;  %s912_s20 = smov %s771_s27 }
 0x2e8   : > { %s913_s21 = smov %s759_s24  ;;  %20 = sbr.rel (!%p18_p8) target bundleno = 5 (0x5), region = 85 }
 0x2ed   :  { %470 = vsyncpa [#allocation3], 1 }
 0x2ee   :  { %472 = vsyncpa [#allocation3 + $0x1], 1 }
 0x2ef   :  { %473 = vsyncpa [#allocation4], 1 }
 0x2f0   :  { %475 = vsyncpa [#allocation4 + $0x1], 1 }

</bundles_post_ra>
